<compile_context>
chip_gen: v6e
topology: v6e:2x2x1
jax: 0.10.0
libtpu: 0.0.40
codegen_flags: <defaults>
</compile_context>

<pallas_src>
import math

import jax
import jax.numpy as jnp
from jax.experimental import pallas as pl
from jax.experimental.pallas import tpu as pltpu

_LANE = 128
_SUBLANE = 8
_TILE_N = 128          # contraction / row tile for the large-N path
_TILED_MIN_N = 256     # switch to the K-tiled kernel at/above this padded N


def _round_up(x, m):
    return (x + m - 1) // m * m


def _plan(node_n):
    """Return (padded_node_n, use_tiled_path)."""
    np8 = _round_up(node_n, _SUBLANE)
    if np8 >= _TILED_MIN_N:
        return _round_up(node_n, _TILE_N), True
    return np8, False


# ----------------------------------------------------------------------------
# Kernels
# ----------------------------------------------------------------------------
def _gcn_fused_kernel(att_ref, x_ref, w_ref, b_ref, o_ref):
    """Single-invocation path (small N).

    att_ref: (Np, N)   rows zero-padded to a sublane multiple, cols unpadded
    x_ref:   (B, N, Fin)
    w_ref:   (Fin, Fp) zero-padded to Fp (multiple of 128) output columns
    b_ref:   (1, Fp)   f32
    o_ref:   (B, Np, Fp) f32
    """
    B = x_ref.shape[0]
    att = att_ref[...]
    w = w_ref[...]
    bias = b_ref[...]                                   # (1, Fp), broadcasts
    for b in range(B):                                  # static unroll (small B)
        ax = jnp.dot(att, x_ref[b],
                     preferred_element_type=jnp.float32)        # (Np, Fin) f32
        out_b = jnp.dot(ax.astype(w.dtype), w,
                        preferred_element_type=jnp.float32)     # (Np, Fp) f32
        o_ref[b] = (out_b + bias).astype(o_ref.dtype)


def _gcn_tiled_kernel(att_ref, x_ref, w_ref, b_ref, o_ref, acc_ref):
    """K-tiled accumulator path (large N; VMEM-safe on v7x).

    Grid = (Np // tile  [parallel], Np // tile  [arbitrary, contraction]).
    att_ref: (tile, tile)      x_ref: (B, tile, Fin)
    w_ref:   (Fin, Fp)         b_ref: (1, Fp)
    o_ref:   (B, tile, Fp)     acc_ref: (B, tile, Fin) f32 scratch
    """
    k = pl.program_id(1)
    B = x_ref.shape[0]

    @pl.when(k == 0)
    def _():
        acc_ref[...] = jnp.zeros_like(acc_ref)

    att = att_ref[...]
    for b in range(B):                                  # static unroll (small B)
        acc_ref[b] += jnp.dot(att, x_ref[b],
                              preferred_element_type=jnp.float32)

    @pl.when(k == pl.num_programs(1) - 1)
    def _():
        w = w_ref[...]
        bias = b_ref[...]
        for b in range(B):
            out_b = jnp.dot(acc_ref[b].astype(w.dtype), w,
                            preferred_element_type=jnp.float32)
            o_ref[b] = (out_b + bias).astype(o_ref.dtype)


# ----------------------------------------------------------------------------
# Host-side parameter prep (done once per layer, off the per-call path)
# ----------------------------------------------------------------------------
def prepare_gcn_params(weight, att, bias, compute_dtype=jnp.float32):
    """Pad / cast layer parameters once.  compute_dtype=bf16 enables the
    bf16-input / f32-accumulate MXU path (recommended on v6e/v7x)."""
    fin, fout = weight.shape
    n = att.shape[0]
    np_, tiled = _plan(n)
    fp = _round_up(fout, _LANE)

    w_p = jnp.pad(weight, ((0, 0), (0, fp - fout))).astype(compute_dtype)
    if tiled:
        att_p = jnp.pad(att, ((0, np_ - n), (0, np_ - n))).astype(compute_dtype)
    else:
        # Pad only the rows (output sublanes); the contraction dim stays at N.
        att_p = jnp.pad(att, ((0, np_ - n), (0, 0))).astype(compute_dtype)
    # Bias / epilogue stay in f32 on every generation (no bf16 VPU on v5e).
    b_p = jnp.pad(bias, (0, fp - fout)).reshape(1, fp).astype(jnp.float32)

    return {"att": att_p, "w": w_p, "b": b_p,
            "node_n": n, "out_features": fout, "in_features": fin}


# ----------------------------------------------------------------------------
# Forward
# ----------------------------------------------------------------------------
def gcn_forward(x, params):
    """x: (B, N, Fin) -> (B, N, Fout)."""
    att_p, w_p, b_p = params["att"], params["w"], params["b"]
    n, fout = params["node_n"], params["out_features"]
    B, xn, fin = x.shape
    assert xn == n and fin == params["in_features"]
    np_, tiled = _plan(n)
    fp = w_p.shape[1]

    xc = x.astype(att_p.dtype)  # no-op in the f32 path; halves DMA bytes in bf16

    if not tiled:
        # Guard: everything lives as full-array VMEM blocks on this path.
        itemsize = jnp.dtype(att_p.dtype).itemsize
        vmem_bytes = (att_p.size * itemsize + xc.size * itemsize
                      + w_p.size * itemsize + b_p.size * 4
                      + B * np_ * fp * 4)
        assert vmem_bytes < 16 * 1024 * 1024, (
            "fused GCN path would exceed the default scoped VMEM; "
            "lower B or raise _TILED_MIN_N to force the tiled path")

        out = pl.pallas_call(
            _gcn_fused_kernel,
            out_shape=jax.ShapeDtypeStruct((B, np_, fp), jnp.float32),
            in_specs=[
                pl.BlockSpec(memory_space=pltpu.MemorySpace.VMEM),  # att
                pl.BlockSpec(memory_space=pltpu.MemorySpace.VMEM),  # x
                pl.BlockSpec(memory_space=pltpu.MemorySpace.VMEM),  # w
                pl.BlockSpec(memory_space=pltpu.MemorySpace.VMEM),  # bias
            ],
            out_specs=pl.BlockSpec(memory_space=pltpu.MemorySpace.VMEM),
        )(att_p, xc, w_p, b_p)
        return out[:, :n, :fout]

    # ---- large-N tiled path (v7x VMEM-safe; megacore-parallel over row tiles)
    if xc.shape[1] != np_:
        xc = jnp.pad(xc, ((0, 0), (0, np_ - xc.shape[1]), (0, 0)))
    tile = _TILE_N
    grid = (np_ // tile, np_ // tile)

    out = pl.pallas_call(
        _gcn_tiled_kernel,
        out_shape=jax.ShapeDtypeStruct((B, np_, fp), jnp.float32),
        grid_spec=pltpu.PrefetchScalarGridSpec(
            num_scalar_prefetch=0,
            grid=grid,
            in_specs=[
                pl.BlockSpec((tile, tile), lambda i, k: (i, k)),       # att
                pl.BlockSpec((B, tile, fin), lambda i, k: (0, k, 0)),  # x
                pl.BlockSpec((fin, fp), lambda i, k: (0, 0)),          # w
                pl.BlockSpec((1, fp), lambda i, k: (0, 0)),            # bias
            ],
            out_specs=pl.BlockSpec((B, tile, fp), lambda i, k: (0, i, 0)),
            scratch_shapes=[pltpu.VMEM((B, tile, fin), jnp.float32)],
        ),
        compiler_params=pltpu.CompilerParams(
            dimension_semantics=("parallel", "arbitrary"),
            vmem_limit_bytes=32 * 1024 * 1024,
        ),
    )(att_p, xc, w_p, b_p)
    return out[:, :n, :fout]


def gcn_reference(x, weight, att, bias):
    return jnp.einsum("nm,bmf->bnf", att, x @ weight) + bias


# ----------------------------------------------------------------------------
if __name__ == "__main__":
    in_features, out_features, node_n, batch = 16, 32, 13, 2

    key = jax.random.PRNGKey(0)
    kx, kw, ka, kb, kx2, ka2 = jax.random.split(key, 6)

    # reset_parameters(): uniform(-stdv, stdv) with stdv = 1/sqrt(out_features)
    stdv = 1.0 / math.sqrt(out_features)
    weight = jax.random.uniform(kw, (in_features, out_features),
                                minval=-stdv, maxval=stdv, dtype=jnp.float32)
    att = jax.random.uniform(ka, (node_n, node_n),
                             minval=-stdv, maxval=stdv, dtype=jnp.float32)
    bias = jax.random.uniform(kb, (out_features,),
                              minval=-stdv, maxval=stdv, dtype=jnp.float32)
    x = jax.random.normal(kx, (batch, node_n, in_features), dtype=jnp.float32)

    ref = gcn_reference(x, weight, att, bias)

    # 1) f32 fused path (numerics match the torch f32 module to tolerance).
    params = prepare_gcn_params(weight, att, bias)          # hoisted, done once
    out = jax.block_until_ready(gcn_forward(x, params))
    assert out.shape == (batch, node_n, out_features)
    assert jnp.allclose(out, ref, atol=1e-5, rtol=1e-5), \
        float(jnp.max(jnp.abs(out - ref)))

    # 2) bf16-input / f32-accumulate MXU path (v6e/v7x throughput, half DMA).
    params_bf16 = prepare_gcn_params(weight, att, bias, compute_dtype=jnp.bfloat16)
    out_bf16 = jax.block_until_ready(gcn_forward(x, params_bf16))
    assert jnp.allclose(out_bf16, ref, atol=2e-2, rtol=2e-2), \
        float(jnp.max(jnp.abs(out_bf16 - ref)))

    # 3) Large-N K-tiled accumulator path (exercises the v7x-safe kernel).
    node_big = 256
    att_big = jax.random.uniform(ka2, (node_big, node_big),
                                 minval=-stdv, maxval=stdv, dtype=jnp.float32)
    x_big = jax.random.normal(kx2, (batch, node_big, in_features), dtype=jnp.float32)
    params_big = prepare_gcn_params(weight, att_big, bias)
    out_big = jax.block_until_ready(gcn_forward(x_big, params_big))
    ref_big = gcn_reference(x_big, weight, att_big, bias)
    assert out_big.shape == (batch, node_big, out_features)
    assert jnp.allclose(out_big, ref_big, atol=1e-4, rtol=1e-4), \
        float(jnp.max(jnp.abs(out_big - ref_big)))

    print("KERNEL_OK")
</pallas_src>

<mosaic_0001>
module attributes {stable_mosaic.version = 11 : i64} {
  func.func @_gcn_fused_kernel(%arg0: memref<16x13xf32, #tpu.memory_space<vmem>>, %arg1: memref<2x13x16xf32, #tpu.memory_space<vmem>>, %arg2: memref<16x128xf32, #tpu.memory_space<vmem>>, %arg3: memref<1x128xf32, #tpu.memory_space<vmem>>, %arg4: memref<2x16x128xf32, #tpu.memory_space<vmem>>) attributes {dimension_semantics = [], scalar_prefetch = 0 : i64, scratch_operands = 0 : i64, tpu.core_type = #tpu.core_type<tc>} {
    %c0 = arith.constant 0 : index
    %c0_0 = arith.constant 0 : index
    %0 = vector.load %arg0[%c0, %c0_0] : memref<16x13xf32, #tpu.memory_space<vmem>>, vector<16x13xf32>
    %c0_1 = arith.constant 0 : index
    %c0_2 = arith.constant 0 : index
    %1 = vector.load %arg2[%c0_1, %c0_2] : memref<16x128xf32, #tpu.memory_space<vmem>>, vector<16x128xf32>
    %c0_3 = arith.constant 0 : index
    %c0_4 = arith.constant 0 : index
    %2 = vector.load %arg3[%c0_3, %c0_4] : memref<1x128xf32, #tpu.memory_space<vmem>>, vector<1x128xf32>
    %c0_5 = arith.constant 0 : index
    %c0_6 = arith.constant 0 : index
    %c0_7 = arith.constant 0 : index
    %3 = vector.load %arg1[%c0_5, %c0_6, %c0_7] : memref<2x13x16xf32, #tpu.memory_space<vmem>>, vector<1x13x16xf32>
    %4 = vector.shape_cast %3 : vector<1x13x16xf32> to vector<13x16xf32>
    %cst = arith.constant dense<0.000000e+00> : vector<16x16xf32>
    %5 = tpu.matmul %0, %4, %cst {dimension_numbers = #tpu.dot_dimension_numbers<[1], [0], [0], [1], [0, 0, 1, 1], [], []>} : vector<16x13xf32>, vector<13x16xf32>, vector<16x16xf32> -> vector<16x16xf32>
    %cst_8 = arith.constant dense<0.000000e+00> : vector<16x128xf32>
    %6 = tpu.matmul %5, %1, %cst_8 {dimension_numbers = #tpu.dot_dimension_numbers<[1], [0], [0], [1], [0, 0, 1, 1], [], []>} : vector<16x16xf32>, vector<16x128xf32>, vector<16x128xf32> -> vector<16x128xf32>
    %7 = vector.broadcast %2 : vector<1x128xf32> to vector<16x128xf32>
    %8 = arith.addf %6, %7 : vector<16x128xf32>
    %c0_9 = arith.constant 0 : index
    %c0_10 = arith.constant 0 : index
    %c0_11 = arith.constant 0 : index
    %9 = vector.load %arg4[%c0_9, %c0_10, %c0_11] : memref<2x16x128xf32, #tpu.memory_space<vmem>>, vector<1x16x128xf32>
    %10 = vector.shape_cast %9 : vector<1x16x128xf32> to vector<16x128xf32>
    %11 = vector.shape_cast %8 : vector<16x128xf32> to vector<1x16x128xf32>
    tpu.vector_store %arg4[%c0_9, %c0_10, %c0_11], %11 {strides = array<i32>} : memref<2x16x128xf32, #tpu.memory_space<vmem>>, vector<1x16x128xf32>,
    %c1 = arith.constant 1 : index
    %c0_12 = arith.constant 0 : index
    %c0_13 = arith.constant 0 : index
    %12 = vector.load %arg1[%c1, %c0_12, %c0_13] : memref<2x13x16xf32, #tpu.memory_space<vmem>>, vector<1x13x16xf32>
    %13 = vector.shape_cast %12 : vector<1x13x16xf32> to vector<13x16xf32>
    %cst_14 = arith.constant dense<0.000000e+00> : vector<16x16xf32>
    %14 = tpu.matmul %0, %13, %cst_14 {dimension_numbers = #tpu.dot_dimension_numbers<[1], [0], [0], [1], [0, 0, 1, 1], [], []>} : vector<16x13xf32>, vector<13x16xf32>, vector<16x16xf32> -> vector<16x16xf32>
    %cst_15 = arith.constant dense<0.000000e+00> : vector<16x128xf32>
    %15 = tpu.matmul %14, %1, %cst_15 {dimension_numbers = #tpu.dot_dimension_numbers<[1], [0], [0], [1], [0, 0, 1, 1], [], []>} : vector<16x16xf32>, vector<16x128xf32>, vector<16x128xf32> -> vector<16x128xf32>
    %16 = vector.broadcast %2 : vector<1x128xf32> to vector<16x128xf32>
    %17 = arith.addf %15, %16 : vector<16x128xf32>
    %c1_16 = arith.constant 1 : index
    %c0_17 = arith.constant 0 : index
    %c0_18 = arith.constant 0 : index
    %18 = vector.load %arg4[%c1_16, %c0_17, %c0_18] : memref<2x16x128xf32, #tpu.memory_space<vmem>>, vector<1x16x128xf32>
    %19 = vector.shape_cast %18 : vector<1x16x128xf32> to vector<16x128xf32>
    %20 = vector.shape_cast %17 : vector<16x128xf32> to vector<1x16x128xf32>
    tpu.vector_store %arg4[%c1_16, %c0_17, %c0_18], %20 {strides = array<i32>} : memref<2x16x128xf32, #tpu.memory_space<vmem>>, vector<1x16x128xf32>,
    return
  }
}

</mosaic_0001>

<bundles_post_ra>
// kernel: tpu_custom_call.1
= control target key start
LH: loop header
LB: loop body
LE: loop exit
PB: predicated region body
PF: predicated region fallthrough
CT: control target
= control target key end

     0   :  { %vm32_vm0 = vcmask 1044480   ;;  %vm25_vm1 = vcmask 105472   ;;  %s526_s0 = inlined_call_operand.vmem [shape: f32[16,13], index: 0, kind: input, shape index: {}]   ;;  %s527_s1 = inlined_call_operand.vmem [shape: f32[2,13,16], index: 1, kind: input, shape index: {}]   ;;  %s528_s2 = inlined_call_operand.vmem [shape: f32[16,128], index: 2, kind: input, shape index: {}]   ;;  %s529_s3 = inlined_call_operand.vmem [shape: f32[1,128], index: 3, kind: input, shape index: {}]   ;;  %s530_s4 = inlined_call_operand.hbm [shape: f32[2,16,128], index: 4, kind: output, shape index: {}]  }
   0x1   :  { %v24_v0 = vld [vmem:[%s527_s1 + $0x8] sm:$0x1f]  ;;  %v23_v1 = vld [vmem:[%s527_s1] sm:$0xff]  ;;  %v389_v4 = vld [vmem:[%s527_s1 + $0x18] sm:$0x1f] }
   0x2   :  { %v18_v2 = vld [vmem:[%s526_s0] sm:$0xff]  ;;  %411 = vmatprep.subr.msk.mxu0 %vm32_vm0, %v24_v0  ;;  %v19_v3 = vld [vmem:[%s526_s0 + $0x8] sm:$0xff] }
   0x3   :  { %415 = vmatprep.mubr.msk.f32.mxu0 %vm25_vm1, %v18_v2  ;;  %412 = vmatpush3.msk.msra.mxu0 %vm32_vm0, %v24_v0 }
   0x4   :  { %9 = vsyncpa [#allocation3], 0  ;;  %413 = vmatprep.subr.mxu0 %v23_v1  ;;  %v388_v5 = vld [vmem:[%s527_s1 + $0x10] sm:$0xff]  ;;  %v21_v6 = vld [vmem:[%s528_s2 + $0x8] sm:$0xff]  ;;  %vm117_vm2 = vcmask 130048  }
   0x5   :  { %414 = vmatpush3.msra.mxu0 %v23_v1  ;;  %418 = vmatprep.subr.mxu1 %v21_v6  ;;  %v20_v7 = vld [vmem:[%s528_s2] sm:$0xff]  ;;  %s464_s2 = smov [#allocation2]  }
   0x6   :  { %416 = vmatmul.mubr.msk.f32.vlgmr.msra.gmra.mxu0 %vm25_vm1, %v19_v3  ;;  %425 = vmatprep.subr.msk.mxu0 %vm32_vm0, %v389_v4  ;;  %v385_v12 = vld [vmem:[%s529_s3] ss:$0 sm:$0xff]  ;;  %s371_s5 = sshll.u32 %s464_s2, 4  ;;  %s372_s5 = int_to_ptr.vmem [resolvable:$true] %s371_s5 }
   0x7   :  { %426 = vmatpush3.msk.msra.mxu0 %vm32_vm0, %v389_v4  ;;  %429 = vmatprep.mubr.msk.f32.mxu0 %vm25_vm1, %v18_v2  ;;  %s442_s6 = scalar_lea.vmem %s372_s5, 512  ;;  %p447_p1 = scmp.lt.s32.totalorder %s372_s5, %s372_s5 }
   0x8   :  { %427 = vmatprep.subr.mxu0 %v388_v5  ;;  %419 = vmatpush3.msra.mxu1 %v21_v6  ;;  %p443_p0 = scmp.ne.s32.totalorder %s372_s5, %s442_s6  ;;  %p448_p2 = scmp.lt.s32.totalorder %s442_s6, %s442_s6 }
   0x9   :  { %428 = vmatpush3.msra.mxu0 %v388_v5  ;;  %420 = vmatprep.subr.mxu1 %v20_v7 }
   0xa   :  { %430 = vmatmul.mubr.msk.f32.vlgmr.msra.gmra.mxu0 %vm25_vm1, %v19_v3  ;;  %421 = vmatpush3.msra.mxu1 %v20_v7  ;;  %p449_p3 = por %p448_p2, %p447_p1 }
   0xb   :  { %432 = vmatprep.subr.mxu1 %v21_v6 }
   0xc   :  { %p450_p4 = pnand %p449_p3, %p443_p0 }
  0xc6   :  { %v417_v8 = vpop.f32.mrf.mxu0 }
  0xc8   :  { %v102_v9 = vpop.f32.mrf.mxu0 }
  0xc9   :  { %422 = vmatprep.mubr.msk.f32.mxu1 %vm117_vm2, %v102_v9 }
  0xca   :  { %423 = vmatmul.mubr.msk.f32.vlgmr.msra.gmra.mxu1 %vm117_vm2, %v417_v8  ;;  %v431_v10 = vpop.f32.mrf.mxu0 }
  0xcb   :  { %433 = vmatpush3.msra.mxu1 %v21_v6 }
  0xcc   :  { %v273_v11 = vpop.f32.mrf.mxu0  ;;  %434 = vmatprep.subr.mxu1 %v20_v7 }
  0xcd   :  { %435 = vmatpush3.msra.mxu1 %v20_v7  ;;  %436 = vmatprep.mubr.msk.f32.mxu1 %vm117_vm2, %v273_v11 }
  0xce   :  { %437 = vmatmul.mubr.msk.f32.vlgmr.msra.gmra.mxu1 %vm117_vm2, %v431_v10 }
 0x18a   :  { %v424_v13 = vpop.f32.mrf.mxu1 }
 0x18b   :  { %v196_v14 = vadd.f32 %v424_v13, %v385_v12 }
 0x18c   :  { %v190_v15 = vpop.f32.mrf.mxu1 }
 0x18d   :  { %200 = vst [vmem:[#allocation2 + $0x8] sm:$0xff] %v196_v14  ;;  %v191_v16 = vadd.f32 %v385_v12, %v190_v15 }
 0x18e   :  { %v438_v17 = vpop.f32.mrf.mxu1 }
 0x18f   :  { %199 = vst [vmem:[#allocation2] sm:$0xff] %v191_v16  ;;  %v360_v18 = vadd.f32 %v438_v17, %v385_v12 }
 0x190   :  { %v354_v19 = vpop.f32.mrf.mxu1 }
 0x191   :  { %365 = vst [vmem:[#allocation2 + $0x18] sm:$0xff] %v360_v18  ;;  %v355_v20 = vadd.f32 %v385_v12, %v354_v19 }
 0x193   :  { %364 = vst [vmem:[#allocation2 + $0x10] sm:$0xff] %v355_v20 }
 0x194   :  { %453 = shalt.err (!%p450_p4)
}
 0x195   :  { %s465_s3 = smov 128   ;;  %s466_s7 = smov 8  }
 0x196   :  { %377 = dma.vmem_to_hbm [thread:$0]  %s372_s5, 512, %s530_s4, [#allocation3], %s465_s3, %s465_s3, %s466_s7  }
 0x197   :  { %462 = dma.done.wait [#allocation3], 512  }
 0x198   :  { %463 = vsyncadd [#allocation3], 4294966784 }
 0x199   :  { %381 = vsyncpa [#allocation3], 1 }

</bundles_post_ra>
